<compile_context>
chip_gen: v7x
topology: tpu7x:2x2x1
jax: 0.10.0
libtpu: 0.0.40
codegen_flags: <defaults>
</compile_context>

<pallas_src>
import jax
import jax.numpy as jnp
from jax.experimental import pallas as pl
from jax.experimental.pallas import tpu as pltpu

LANE = 128
ROW_TILE = 256  # rows (= B*H*W) tile; multiple of 8 sublanes


def _conv1x1_bn_relu_kernel(x_ref, w_ref, scale_ref, offset_ref, o_ref):
    # x_ref:      (TB, Cin)   activation tile (channels on lanes)
    # w_ref:      (Cin, Cp)   1x1 transposed-conv weight, Cp = 128-padded Cout
    # scale_ref:  (1,  Cp)    BN scale  = gamma / sqrt(running_var + eps)
    # offset_ref: (1,  Cp)    conv_bias*scale + beta - running_mean*scale
    # o_ref:      (TB, Cp)
    y = jnp.dot(x_ref[...], w_ref[...], preferred_element_type=jnp.float32)
    y = y * scale_ref[...] + offset_ref[...]          # BN(eval) + conv bias, f32 epilogue
    o_ref[...] = jnp.maximum(y, 0.0).astype(o_ref.dtype)


def last_conv_forward(x, params, *, eps=1e-5, row_tile=ROW_TILE):
    """LastConv forward: ConvTranspose2d(k=1,s=1) + BatchNorm2d(eval) + ReLU.

    x: (B, Cin, H, W) NCHW, like PyTorch.
    params: conv_w (Cin, Cout, 1, 1), conv_b (Cout,), bn_gamma/bn_beta/
            bn_mean/bn_var (Cout,).
    """
    w4 = params["conv_w"]
    # TODO(synk): general kernel_size>1 / stride>1 ConvTranspose2d not implemented;
    # the module default (k=1, s=1) reduces exactly to a pointwise channel matmul.
    assert w4.shape[2] == 1 and w4.shape[3] == 1, "only kernel_size=1, stride=1 supported"
    Cin, Cout = w4.shape[0], w4.shape[1]
    B, _, H, W = x.shape

    # Eval-mode BatchNorm folded to a per-out-channel affine (scale, offset).
    scale = params["bn_gamma"] / jnp.sqrt(params["bn_var"] + eps)          # (Cout,)
    offset = params["conv_b"] * scale + params["bn_beta"] - params["bn_mean"] * scale

    # Lane-dense padding of the out-channel axis (unmasked stores inside kernel).
    Cp = max(LANE, pl.cdiv(Cout, LANE) * LANE)
    w_p = jnp.zeros((Cin, Cp), w4.dtype).at[:, :Cout].set(w4[:, :, 0, 0])
    scale_p = jnp.zeros((1, Cp), scale.dtype).at[:, :Cout].set(scale)
    offset_p = jnp.zeros((1, Cp), offset.dtype).at[:, :Cout].set(offset)

    # NCHW -> (rows, Cin): channels on the lane axis.
    rows = B * H * W
    x2 = jnp.transpose(x, (0, 2, 3, 1)).reshape(rows, Cin)

    tb = min(row_tile, max(8, rows))
    rows_p = pl.cdiv(rows, tb) * tb
    if rows_p != rows:
        x2 = jnp.pad(x2, ((0, rows_p - rows), (0, 0)))
    grid = (rows_p // tb,)

    cost = pl.CostEstimate(
        flops=2 * rows_p * Cin * Cp,
        transcendentals=0,
        bytes_accessed=4 * (rows_p * Cin + Cin * Cp + 2 * Cp + rows_p * Cp),
    )

    out_p = pl.pallas_call(
        _conv1x1_bn_relu_kernel,
        out_shape=jax.ShapeDtypeStruct((rows_p, Cp), x.dtype),
        grid=grid,
        in_specs=[
            pl.BlockSpec((tb, Cin), lambda i: (i, 0)),     # activation tiles stream
            pl.BlockSpec((Cin, Cp), lambda i: (0, 0)),     # weight stays resident
            pl.BlockSpec((1, Cp), lambda i: (0, 0)),       # BN scale resident
            pl.BlockSpec((1, Cp), lambda i: (0, 0)),       # BN offset resident
        ],
        out_specs=pl.BlockSpec((tb, Cp), lambda i: (i, 0)),
        compiler_params=pltpu.CompilerParams(
            dimension_semantics=("parallel",)),            # megacore-shardable on v7x
        cost_estimate=cost,
    )(x2, w_p, scale_p, offset_p)

    # Drop padded lanes / rows and restore NCHW.
    out = out_p[:rows, :Cout].reshape(B, H, W, Cout)
    return jnp.transpose(out, (0, 3, 1, 2))


def reference_forward(x, params, eps=1e-5):
    """Pure-JAX reference: conv-transpose 1x1 + eval-mode BN + ReLU."""
    B, Cin, H, W = x.shape
    w2 = params["conv_w"][:, :, 0, 0]                       # (Cin, Cout)
    Cout = w2.shape[1]
    x2 = jnp.transpose(x, (0, 2, 3, 1)).reshape(B * H * W, Cin)
    y = x2 @ w2 + params["conv_b"][None, :]
    inv = 1.0 / jnp.sqrt(params["bn_var"] + eps)
    y = (y - params["bn_mean"][None, :]) * (params["bn_gamma"] * inv)[None, :] \
        + params["bn_beta"][None, :]
    y = jnp.maximum(y, 0.0)
    return jnp.transpose(y.reshape(B, H, W, Cout), (0, 3, 1, 2))


def init_params(key, in_channels, out_channels, dtype=jnp.float32):
    """Deterministic synthetic parameters (PyTorch ConvTranspose2d/BatchNorm2d shapes)."""
    kw, kb, kg, kbt, km, kv = jax.random.split(key, 6)
    limit = 1.0 / jnp.sqrt(jnp.float32(in_channels))
    return {
        "conv_w": jax.random.uniform(kw, (in_channels, out_channels, 1, 1), dtype, -limit, limit),
        "conv_b": jax.random.uniform(kb, (out_channels,), dtype, -limit, limit),
        "bn_gamma": 1.0 + 0.1 * jax.random.normal(kg, (out_channels,), dtype),
        "bn_beta": 0.1 * jax.random.normal(kbt, (out_channels,), dtype),
        "bn_mean": 0.1 * jax.random.normal(km, (out_channels,), dtype),
        "bn_var": jnp.abs(1.0 + 0.1 * jax.random.normal(kv, (out_channels,), dtype)),
    }
    # TODO(synk): BatchNorm2d training-mode (batch statistics + running-stat update)
    # is not implemented; eval-mode running statistics are used.


if __name__ == "__main__":
    in_channels, out_channels = 4, 8
    B, H, W = 2, 16, 16

    key = jax.random.PRNGKey(0)
    key, kx, kp = jax.random.split(key, 3)
    x = jax.random.normal(kx, (B, in_channels, H, W), jnp.float32)
    params = init_params(kp, in_channels, out_channels)

    out = last_conv_forward(x, params)
    out = jax.block_until_ready(out)

    ref = reference_forward(x, params)
    assert out.shape == (B, out_channels, H, W)
    assert jnp.allclose(out, ref, atol=1e-5, rtol=1e-4), float(jnp.max(jnp.abs(out - ref)))

    print("KERNEL_OK")
</pallas_src>

<mosaic_0001>
module attributes {stable_mosaic.version = 11 : i64} {
  func.func @_conv1x1_bn_relu_kernel(%arg0: i32, %arg1: memref<256x4xf32, #tpu.memory_space<vmem>>, %arg2: memref<4x128xf32, #tpu.memory_space<vmem>>, %arg3: memref<1x128xf32, #tpu.memory_space<vmem>>, %arg4: memref<1x128xf32, #tpu.memory_space<vmem>>, %arg5: memref<256x128xf32, #tpu.memory_space<vmem>>) attributes {dimension_semantics = [#tpu.dimension_semantics<parallel>], iteration_bounds = array<i64: 2>, scalar_prefetch = 0 : i64, scratch_operands = 0 : i64, tpu.core_type = #tpu.core_type<tc>, window_params = [{transform_indices = @transform_0, window_bounds = array<i64: 256, 4>}, {pipeline_mode = #tpu.pipeline_mode<synchronous>, transform_indices = @transform_1, window_bounds = array<i64: 4, 128>}, {pipeline_mode = #tpu.pipeline_mode<synchronous>, transform_indices = @transform_2, window_bounds = array<i64: 1, 128>}, {pipeline_mode = #tpu.pipeline_mode<synchronous>, transform_indices = @transform_3, window_bounds = array<i64: 1, 128>}, {transform_indices = @transform_4, window_bounds = array<i64: 256, 128>}]} {
    %c0 = arith.constant 0 : index
    %c0_0 = arith.constant 0 : index
    %0 = vector.load %arg1[%c0, %c0_0] : memref<256x4xf32, #tpu.memory_space<vmem>>, vector<256x4xf32>
    %c0_1 = arith.constant 0 : index
    %c0_2 = arith.constant 0 : index
    %1 = vector.load %arg2[%c0_1, %c0_2] : memref<4x128xf32, #tpu.memory_space<vmem>>, vector<4x128xf32>
    %cst = arith.constant dense<0.000000e+00> : vector<256x128xf32>
    %2 = tpu.matmul %0, %1, %cst {dimension_numbers = #tpu.dot_dimension_numbers<[1], [0], [0], [1], [0, 0, 1, 1], [], []>} : vector<256x4xf32>, vector<4x128xf32>, vector<256x128xf32> -> vector<256x128xf32>
    %c0_3 = arith.constant 0 : index
    %c0_4 = arith.constant 0 : index
    %3 = vector.load %arg3[%c0_3, %c0_4] : memref<1x128xf32, #tpu.memory_space<vmem>>, vector<1x128xf32>
    %4 = vector.broadcast %3 : vector<1x128xf32> to vector<256x128xf32>
    %5 = arith.mulf %2, %4 : vector<256x128xf32>
    %c0_5 = arith.constant 0 : index
    %c0_6 = arith.constant 0 : index
    %6 = vector.load %arg4[%c0_5, %c0_6] : memref<1x128xf32, #tpu.memory_space<vmem>>, vector<1x128xf32>
    %7 = vector.broadcast %6 : vector<1x128xf32> to vector<256x128xf32>
    %8 = arith.addf %5, %7 : vector<256x128xf32>
    %cst_7 = arith.constant 0.000000e+00 : f32
    %9 = vector.broadcast %cst_7 : f32 to vector<256x128xf32>
    %10 = arith.maximumf %8, %9 : vector<256x128xf32>
    %c0_8 = arith.constant 0 : index
    %c0_9 = arith.constant 0 : index
    %11 = vector.load %arg5[%c0_8, %c0_9] : memref<256x128xf32, #tpu.memory_space<vmem>>, vector<256x128xf32>
    tpu.vector_store %arg5[%c0_8, %c0_9], %10 {strides = array<i32>} : memref<256x128xf32, #tpu.memory_space<vmem>>, vector<256x128xf32>,
    return
  }
  func.func @transform_0(%arg0: i32) -> (i32, i32) {
    %c0_i32 = arith.constant 0 : i32
    %c0_i32_0 = arith.constant 0 : i32
    return %arg0, %c0_i32 : i32, i32
  }
  func.func @transform_1(%arg0: i32) -> (i32, i32) {
    %c0_i32 = arith.constant 0 : i32
    %c0_i32_0 = arith.constant 0 : i32
    %c0_i32_1 = arith.constant 0 : i32
    return %c0_i32, %c0_i32_0 : i32, i32
  }
  func.func @transform_2(%arg0: i32) -> (i32, i32) {
    %c0_i32 = arith.constant 0 : i32
    %c0_i32_0 = arith.constant 0 : i32
    %c0_i32_1 = arith.constant 0 : i32
    return %c0_i32, %c0_i32_0 : i32, i32
  }
  func.func @transform_3(%arg0: i32) -> (i32, i32) {
    %c0_i32 = arith.constant 0 : i32
    %c0_i32_0 = arith.constant 0 : i32
    %c0_i32_1 = arith.constant 0 : i32
    return %c0_i32, %c0_i32_0 : i32, i32
  }
  func.func @transform_4(%arg0: i32) -> (i32, i32) {
    %c0_i32 = arith.constant 0 : i32
    %c0_i32_0 = arith.constant 0 : i32
    return %arg0, %c0_i32 : i32, i32
  }
}

</mosaic_0001>

<bundles_post_ra>
// kernel: tpu_custom_call.1
= control target key start
LH: loop header
LB: loop body
LE: loop exit
PB: predicated region body
PF: predicated region fallthrough
CT: control target
= control target key end

     0   :  { %9 = vsyncpa [#allocation3], 0  ;;  %s1326_s0 = inlined_call_operand.vmem [shape: f32[512,4], index: 0, kind: input, shape index: {}]   ;;  %s1327_s1 = inlined_call_operand.vmem [shape: f32[4,128], index: 1, kind: input, shape index: {}]   ;;  %s1328_s2 = inlined_call_operand.vmem [shape: f32[1,128], index: 2, kind: input, shape index: {}]   ;;  %s1329_s3 = inlined_call_operand.vmem [shape: f32[1,128], index: 3, kind: input, shape index: {}]   ;;  %s1330_s4 = inlined_call_operand.hbm [shape: f32[512,128], index: 4, kind: output, shape index: {}]  }
   0x1   :  { %11 = vsyncpa [#allocation3 + $0x1], 0  ;;  %s1042_s15 = smov 0   ;;  %s1044_s16 = smov 0  }
   0x2   :  { %s1046_s17 = smov 0   ;;  %s1048_s18 = smov 0  }
   0x3 LB: > { %s1063_s19 = sadd.s32 4294967295, %s1012_s18   ;;  %s776_s20 = sadd.s32 4294967294, %s1012_s18   ;;  %s1012_s18 = sphi %s1048_s18, %s1336_s18   ;;  %s1008_s17 = sphi %s1046_s17, %s1335_s17   ;;  %s1004_s16 = sphi %s1044_s16, %s1334_s16   ;;  %s1000_s15 = sphi %s1042_s15, %s1333_s15  }
   0x4   : > { %s1067_s21 = sadd.s32 1, %s1012_s18   ;;  %s113_s22 = sadd.s32 1, %s1008_s17 }
   0x5   : > { %s110_s23 = ssub.s32 %s1012_s18, %s1067_s21  ;;  %p123_p0 = scmp.ne.s32.totalorder %s1008_s17, %s1004_s16 }
   0x6   : > { %p111_p1 = scmp.eq.s32.totalorder %s110_s23, 0  ;;  %p124_p2 = scmp.eq.s32.totalorder %s1063_s19, 1 }
   0x7   : > { %p129_p3 = scmp.ne.s32.totalorder %s1004_s16, %s1000_s15  ;;  %p130_p4 = scmp.eq.s32.totalorder %s776_s20, 1 }
   0x8   : > { %s1078_s24 = scalar_select %p111_p1, %s1008_s17, %s113_s22  }
   0x9   : > { %p1080_p5 = por %p124_p2, %p123_p0  ;;  %p1084_p6 = por %p130_p4, %p129_p3 }
   0xa   : > { %p779_p7 = scmp.ge.s32.totalorder %s1012_s18, 1  ;;  %p166_p8 = scmp.lt.s32.totalorder %s1012_s18, 3 }
   0xc   : > { %p167_p9 = pnand %p779_p7, %p166_p8 }
   0xd   : > { %v231_v0 = vld [vmem:[%s1327_s1] sm:$0xf] (!%p167_p9)  ;;  %vm329_vm0 = vcmask (!%p167_p9), 1043456   ;;  %s781_s29 = sshll.u32 (!%p167_p9), %s1063_s19, 5  ;;  %vm232_vm1 = vcmask (!%p167_p9), 31744   ;;  %s189_s8 = sand.u32 (!%p167_p9), 1, %s1004_s16  }
   0xe   : > { %170 = sbr.rel (%p167_p9) target bundleno = 289 (0x121), region = 36  ;;  %857 = vmatprep.subr.msk.mxu0 (!%p167_p9), %vm329_vm0, %v231_v0  ;;  %907 = vmatprep.subr.msk.mxu1 (!%p167_p9), %vm329_vm0, %v231_v0  ;;  %p193_p10 = scmp.lt.s32.totalorder (!%p167_p9), %s781_s29, 63  ;;  %v1167_v33 = vld [vmem:[%s1328_s2] ss:$0 sm:$0xff] (!%p167_p9) }
   0xf   : > { %858 = vmatpush3.msk.msra.mxu0 (!%p167_p9), %vm329_vm0, %v231_v0  ;;  %908 = vmatpush3.msk.msra.mxu1 (!%p167_p9), %vm329_vm0, %v231_v0  ;;  %v1172_v35 = vld [vmem:[%s1329_s3] ss:$0 sm:$0xff] (!%p167_p9)  ;;  %s780_s13 = sshll.u32 (!%p167_p9), %s189_s8, 8  ;;  %s823_s20 = sshll.u32 (!%p167_p9), %s1063_s19, 12 }
  0x10   : > { %s1188_s14 = scalar_lea.vmem (!%p167_p9), [#allocation2], %s780_s13  ;;  %s1275_s27 = scalar_lea.hbm (!%p167_p9), %s1330_s4, %s823_s20 }
  0x11   : > { %s714_s22 = sshll.u32 (!%p167_p9), %s1188_s14, 4  ;;  %s1285_s28 = scalar_lea.sflag (!%p167_p9), [#allocation3], %s189_s8  ;;  %s1277_s22 = int_to_ptr.vmem [resolvable:$true] %s714_s22 }
  0x15   : > { %s1338_s29 = smov (!%p193_p10, %s781_s29), 63 }
  0x16   : > { %s782_s30 = sshll.u32 %s1338_s29, 3  ;;  %s950_s29 = scalar_lea.vmem %s1277_s22, 4096 }
  0x17   : > { %s1097_s7 = scalar_lea.vmem %s1326_s0, %s782_s30  ;;  %p951_p11 = scmp.ne.s32.totalorder %s1277_s22, %s950_s29 }
  0x18   : > { %v199_v1 = vld [vmem:[%s1097_s7] sm:$0xff]  ;;  %v200_v3 = vld [vmem:[%s1097_s7 + $0x8] sm:$0xff]  ;;  %v201_v5 = vld [vmem:[%s1097_s7 + $0x10] sm:$0xff]  ;;  %s1014_s30 = smov [#allocation2]  }
  0x19   : > { %v215_v2 = vld [vmem:[%s1097_s7 + $0x80] sm:$0xff]  ;;  %859 = vmatprep.mubr.msk.f32.mxu0 %vm232_vm1, %v199_v1  ;;  %v216_v4 = vld [vmem:[%s1097_s7 + $0x88] sm:$0xff]  ;;  %v217_v6 = vld [vmem:[%s1097_s7 + $0x90] sm:$0xff]  ;;  %p952_p12 = pnand %p951_p11, %p1080_p5  ;;  %s954_s5 = sshll.u32 %s1014_s30, 4  ;;  %s955_s5 = int_to_ptr.vmem [resolvable:$false] %s954_s5 }
  0x1a   : > { %883 = vmatprep.mubr.msk.f32.mxu1 %vm232_vm1, %v215_v2  ;;  %860 = vmatmul.mubr.msk.f32.vlgmr.msra.gmra.mrb[0].mxu0 %vm232_vm1, %v200_v3  ;;  %v202_v7 = vld [vmem:[%s1097_s7 + $0x18] sm:$0xff]  ;;  %v203_v9 = vld [vmem:[%s1097_s7 + $0x20] sm:$0xff]  ;;  %v204_v11 = vld [vmem:[%s1097_s7 + $0x28] sm:$0xff]  ;;  %s956_s6 = scalar_lea.vmem %s955_s5, 8192  ;;  %p957_p0 = scmp.lt.s32.totalorder %s1277_s22, %s955_s5 }
  0x1b   : > { %884 = vmatmul.mubr.msk.f32.vlgmr.msra.gmra.mrb[0].mxu1 %vm232_vm1, %v216_v4  ;;  %862 = vmatprep.mubr.msk.f32.mxu0 %vm232_vm1, %v201_v5  ;;  %v218_v8 = vld [vmem:[%s1097_s7 + $0x98] sm:$0xff]  ;;  %v219_v10 = vld [vmem:[%s1097_s7 + $0xa0] sm:$0xff]  ;;  %v220_v12 = vld [vmem:[%s1097_s7 + $0xa8] sm:$0xff]  ;;  %p953_p13 = pneg %p952_p12  ;;  %p958_p1 = scmp.lt.s32.totalorder %s956_s6, %s950_s29 }
  0x1c   : > { %886 = vmatprep.mubr.msk.f32.mxu1 %vm232_vm1, %v217_v6  ;;  %v205_v13 = vld [vmem:[%s1097_s7 + $0x30] sm:$0xff]  ;;  %v206_v15 = vld [vmem:[%s1097_s7 + $0x38] sm:$0xff]  ;;  %v207_v17 = vld [vmem:[%s1097_s7 + $0x40] sm:$0xff] }
  0x1d   : > { %v221_v14 = vld [vmem:[%s1097_s7 + $0xb0] sm:$0xff]  ;;  %v222_v16 = vld [vmem:[%s1097_s7 + $0xb8] sm:$0xff]  ;;  %v223_v18 = vld [vmem:[%s1097_s7 + $0xc0] sm:$0xff]  ;;  %p959_p2 = por %p958_p1, %p957_p0 }
  0x1e   : > { %863 = vmatmul.mubr.msk.f32.gmra.mrb[2].mxu0 %vm232_vm1, %v202_v7  ;;  %v208_v19 = vld [vmem:[%s1097_s7 + $0x48] sm:$0xff]  ;;  %v209_v21 = vld [vmem:[%s1097_s7 + $0x50] sm:$0xff]  ;;  %v210_v23 = vld [vmem:[%s1097_s7 + $0x58] sm:$0xff] }
  0x1f   : > { %887 = vmatmul.mubr.msk.f32.gmra.mrb[2].mxu1 %vm232_vm1, %v218_v8  ;;  %865 = vmatprep.mubr.msk.f32.mxu0 %vm232_vm1, %v203_v9  ;;  %v224_v20 = vld [vmem:[%s1097_s7 + $0xc8] sm:$0xff]  ;;  %v225_v22 = vld [vmem:[%s1097_s7 + $0xd0] sm:$0xff]  ;;  %v226_v24 = vld [vmem:[%s1097_s7 + $0xd8] sm:$0xff]  ;;  %p960_p3 = pnand %p959_p2, %p953_p13 }
  0x20   : > { %889 = vmatprep.mubr.msk.f32.mxu1 %vm232_vm1, %v219_v10  ;;  %v211_v25 = vld [vmem:[%s1097_s7 + $0x60] sm:$0xff]  ;;  %v212_v27 = vld [vmem:[%s1097_s7 + $0x68] sm:$0xff]  ;;  %v213_v29 = vld [vmem:[%s1097_s7 + $0x70] sm:$0xff] }
  0x21   : > { %v227_v26 = vld [vmem:[%s1097_s7 + $0xe0] sm:$0xff]  ;;  %v228_v28 = vld [vmem:[%s1097_s7 + $0xe8] sm:$0xff]  ;;  %v229_v30 = vld [vmem:[%s1097_s7 + $0xf0] sm:$0xff] }
  0x22   : > { %866 = vmatmul.mubr.msk.f32.gmra.mrb[4].mxu0 %vm232_vm1, %v204_v11  ;;  %v214_v31 = vld [vmem:[%s1097_s7 + $0x78] sm:$0xff] }
  0x23   : > { %890 = vmatmul.mubr.msk.f32.gmra.mrb[4].mxu1 %vm232_vm1, %v220_v12  ;;  %868 = vmatprep.mubr.msk.f32.mxu0 %vm232_vm1, %v205_v13  ;;  %v230_v32 = vld [vmem:[%s1097_s7 + $0xf8] sm:$0xff] }
  0x24   : > { %892 = vmatprep.mubr.msk.f32.mxu1 %vm232_vm1, %v221_v14 }
  0x26   : > { %869 = vmatmul.mubr.msk.f32.gmra.mrb[6].mxu0 %vm232_vm1, %v206_v15 }
  0x27   : > { %893 = vmatmul.mubr.msk.f32.gmra.mrb[6].mxu1 %vm232_vm1, %v222_v16  ;;  %871 = vmatprep.mubr.msk.f32.mxu0 %vm232_vm1, %v207_v17 }
  0x28   : > { %895 = vmatprep.mubr.msk.f32.mxu1 %vm232_vm1, %v223_v18 }
  0x2a   : > { %872 = vmatmul.mubr.msk.f32.gmra.mrb[8].mxu0 %vm232_vm1, %v208_v19 }
  0x2b   : > { %896 = vmatmul.mubr.msk.f32.gmra.mrb[8].mxu1 %vm232_vm1, %v224_v20  ;;  %874 = vmatprep.mubr.msk.f32.mxu0 %vm232_vm1, %v209_v21 }
  0x2c   : > { %898 = vmatprep.mubr.msk.f32.mxu1 %vm232_vm1, %v225_v22 }
  0x2e   : > { %875 = vmatmul.mubr.msk.f32.gmra.mrb[10].mxu0 %vm232_vm1, %v210_v23 }
  0x2f   : > { %899 = vmatmul.mubr.msk.f32.gmra.mrb[10].mxu1 %vm232_vm1, %v226_v24  ;;  %877 = vmatprep.mubr.msk.f32.mxu0 %vm232_vm1, %v211_v25 }
  0x30   : > { %901 = vmatprep.mubr.msk.f32.mxu1 %vm232_vm1, %v227_v26 }
  0x32   : > { %878 = vmatmul.mubr.msk.f32.gmra.mrb[12].mxu0 %vm232_vm1, %v212_v27 }
  0x33   : > { %902 = vmatmul.mubr.msk.f32.gmra.mrb[12].mxu1 %vm232_vm1, %v228_v28  ;;  %880 = vmatprep.mubr.msk.f32.mxu0 %vm232_vm1, %v213_v29 }
  0x34   : > { %904 = vmatprep.mubr.msk.f32.mxu1 %vm232_vm1, %v229_v30 }
  0x36   : > { %881 = vmatmul.mubr.msk.f32.gmra.mrb[14].mxu0 %vm232_vm1, %v214_v31 }
  0x37   : > { %905 = vmatmul.mubr.msk.f32.gmra.mrb[14].mxu1 %vm232_vm1, %v230_v32 }
  0xed   : > { %v861_v34 = vpop.f32.mrb[0].mxu0 }
  0xee   : > { %v885_v36 = vpop.f32.mrb[0].mxu1  ;;  %v566_v37 = vmul.f32 %v861_v34, %v1167_v33  ;;  %v399_v39 = vpop.f32.mrb[1].mxu0 }
  0xef   : > { %v582_v38 = vmul.f32 %v885_v36, %v1167_v33  ;;  %v479_v40 = vpop.f32.mrb[1].mxu1  ;;  %v565_v41 = vmul.f32 %v1167_v33, %v399_v39 }
  0xf0   : > { %v581_v42 = vmul.f32 %v1167_v33, %v479_v40  ;;  %v605_v43 = vadd.f32 %v1172_v35, %v566_v37 }
  0xf1   : > { %v621_v44 = vadd.f32 %v1172_v35, %v582_v38  ;;  %v604_v45 = vadd.f32 %v1172_v35, %v565_v41  ;;  %v864_v47 = vpop.f32.mrb[2].mxu0 }
  0xf2   : > { %v620_v46 = vadd.f32 %v1172_v35, %v581_v42  ;;  %v888_v48 = vpop.f32.mrb[2].mxu1  ;;  %v637_v49 = vmax.f32 %v605_v43, 0.0  ;;  %v568_v51 = vmul.f32 %v864_v47, %v1167_v33  ;;  %v409_v53 = vpop.f32.mrb[3].mxu0 }
  0xf3   : > { %v653_v50 = vmax.f32 %v621_v44, 0.0  ;;  %v584_v52 = vmul.f32 %v888_v48, %v1167_v33  ;;  %v489_v54 = vpop.f32.mrb[3].mxu1  ;;  %v636_v55 = vmax.f32 %v604_v45, 0.0  ;;  %v567_v57 = vmul.f32 %v1167_v33, %v409_v53 }
  0xf4   : > { %v652_v56 = vmax.f32 %v620_v46, 0.0  ;;  %v583_v58 = vmul.f32 %v1167_v33, %v489_v54  ;;  %669 = vst [vmem:[%s1188_s14 + $0x8] sm:$0xff] %v637_v49  ;;  %v607_v59 = vadd.f32 %v1172_v35, %v568_v51 }
  0xf5   : > { %685 = vst [vmem:[%s1188_s14 + $0x88] sm:$0xff] %v653_v50  ;;  %v623_v60 = vadd.f32 %v1172_v35, %v584_v52  ;;  %668 = vst [vmem:[%s1188_s14] sm:$0xff] %v636_v55  ;;  %v606_v61 = vadd.f32 %v1172_v35, %v567_v57  ;;  %v867_v63 = vpop.f32.mrb[4].mxu0 }
  0xf6   : > { %684 = vst [vmem:[%s1188_s14 + $0x80] sm:$0xff] %v652_v56  ;;  %v622_v62 = vadd.f32 %v1172_v35, %v583_v58  ;;  %v891_v0 = vpop.f32.mrb[4].mxu1  ;;  %v639_v1 = vmax.f32 %v607_v59, 0.0  ;;  %v570_v3 = vmul.f32 %v867_v63, %v1167_v33  ;;  %v419_v5 = vpop.f32.mrb[5].mxu0 }
  0xf7   : > { %v655_v2 = vmax.f32 %v623_v60, 0.0  ;;  %v586_v4 = vmul.f32 %v891_v0, %v1167_v33  ;;  %v499_v6 = vpop.f32.mrb[5].mxu1  ;;  %v638_v7 = vmax.f32 %v606_v61, 0.0  ;;  %v569_v9 = vmul.f32 %v1167_v33, %v419_v5 }
  0xf8   : > { %v654_v8 = vmax.f32 %v622_v62, 0.0  ;;  %v585_v10 = vmul.f32 %v1167_v33, %v499_v6  ;;  %671 = vst [vmem:[%s1188_s14 + $0x18] sm:$0xff] %v639_v1  ;;  %v609_v11 = vadd.f32 %v1172_v35, %v570_v3 }
  0xf9   : > { %687 = vst [vmem:[%s1188_s14 + $0x98] sm:$0xff] %v655_v2  ;;  %v625_v12 = vadd.f32 %v1172_v35, %v586_v4  ;;  %670 = vst [vmem:[%s1188_s14 + $0x10] sm:$0xff] %v638_v7  ;;  %v608_v13 = vadd.f32 %v1172_v35, %v569_v9  ;;  %v870_v15 = vpop.f32.mrb[6].mxu0 }
  0xfa   : > { %686 = vst [vmem:[%s1188_s14 + $0x90] sm:$0xff] %v654_v8  ;;  %v624_v14 = vadd.f32 %v1172_v35, %v585_v10  ;;  %v894_v16 = vpop.f32.mrb[6].mxu1  ;;  %v641_v17 = vmax.f32 %v609_v11, 0.0  ;;  %v572_v19 = vmul.f32 %v870_v15, %v1167_v33  ;;  %v429_v21 = vpop.f32.mrb[7].mxu0 }
  0xfb   : > { %v657_v18 = vmax.f32 %v625_v12, 0.0  ;;  %v588_v20 = vmul.f32 %v894_v16, %v1167_v33  ;;  %v509_v22 = vpop.f32.mrb[7].mxu1  ;;  %v640_v23 = vmax.f32 %v608_v13, 0.0  ;;  %v571_v25 = vmul.f32 %v1167_v33, %v429_v21 }
  0xfc   : > { %v656_v24 = vmax.f32 %v624_v14, 0.0  ;;  %v587_v26 = vmul.f32 %v1167_v33, %v509_v22  ;;  %673 = vst [vmem:[%s1188_s14 + $0x28] sm:$0xff] %v641_v17  ;;  %v611_v27 = vadd.f32 %v1172_v35, %v572_v19 }
  0xfd   : > { %689 = vst [vmem:[%s1188_s14 + $0xa8] sm:$0xff] %v657_v18  ;;  %v627_v28 = vadd.f32 %v1172_v35, %v588_v20  ;;  %672 = vst [vmem:[%s1188_s14 + $0x20] sm:$0xff] %v640_v23  ;;  %v610_v29 = vadd.f32 %v1172_v35, %v571_v25  ;;  %v873_v31 = vpop.f32.mrb[8].mxu0 }
  0xfe   : > { %688 = vst [vmem:[%s1188_s14 + $0xa0] sm:$0xff] %v656_v24  ;;  %v626_v30 = vadd.f32 %v1172_v35, %v587_v26  ;;  %v897_v32 = vpop.f32.mrb[8].mxu1  ;;  %v643_v34 = vmax.f32 %v611_v27, 0.0  ;;  %v574_v37 = vmul.f32 %v873_v31, %v1167_v33  ;;  %v439_v39 = vpop.f32.mrb[9].mxu0 }
  0xff   : > { %v659_v36 = vmax.f32 %v627_v28, 0.0  ;;  %v590_v38 = vmul.f32 %v897_v32, %v1167_v33  ;;  %v519_v40 = vpop.f32.mrb[9].mxu1  ;;  %v642_v41 = vmax.f32 %v610_v29, 0.0  ;;  %v573_v43 = vmul.f32 %v1167_v33, %v439_v39 }
 0x100   : > { %v658_v42 = vmax.f32 %v626_v30, 0.0  ;;  %v589_v44 = vmul.f32 %v1167_v33, %v519_v40  ;;  %675 = vst [vmem:[%s1188_s14 + $0x38] sm:$0xff] %v643_v34  ;;  %v613_v45 = vadd.f32 %v1172_v35, %v574_v37 }
 0x101   : > { %691 = vst [vmem:[%s1188_s14 + $0xb8] sm:$0xff] %v659_v36  ;;  %v629_v46 = vadd.f32 %v1172_v35, %v590_v38  ;;  %674 = vst [vmem:[%s1188_s14 + $0x30] sm:$0xff] %v642_v41  ;;  %v612_v47 = vadd.f32 %v1172_v35, %v573_v43  ;;  %v876_v49 = vpop.f32.mrb[10].mxu0 }
 0x102   : > { %690 = vst [vmem:[%s1188_s14 + $0xb0] sm:$0xff] %v658_v42  ;;  %v628_v48 = vadd.f32 %v1172_v35, %v589_v44  ;;  %v900_v50 = vpop.f32.mrb[10].mxu1  ;;  %v645_v51 = vmax.f32 %v613_v45, 0.0  ;;  %v576_v53 = vmul.f32 %v876_v49, %v1167_v33  ;;  %v449_v55 = vpop.f32.mrb[11].mxu0 }
 0x103   : > { %v661_v52 = vmax.f32 %v629_v46, 0.0  ;;  %v592_v54 = vmul.f32 %v900_v50, %v1167_v33  ;;  %v529_v56 = vpop.f32.mrb[11].mxu1  ;;  %v644_v57 = vmax.f32 %v612_v47, 0.0  ;;  %v575_v59 = vmul.f32 %v1167_v33, %v449_v55 }
 0x104   : > { %v660_v58 = vmax.f32 %v628_v48, 0.0  ;;  %v591_v60 = vmul.f32 %v1167_v33, %v529_v56  ;;  %677 = vst [vmem:[%s1188_s14 + $0x48] sm:$0xff] %v645_v51  ;;  %v615_v61 = vadd.f32 %v1172_v35, %v576_v53 }
 0x105   : > { %693 = vst [vmem:[%s1188_s14 + $0xc8] sm:$0xff] %v661_v52  ;;  %v631_v62 = vadd.f32 %v1172_v35, %v592_v54  ;;  %676 = vst [vmem:[%s1188_s14 + $0x40] sm:$0xff] %v644_v57  ;;  %v614_v63 = vadd.f32 %v1172_v35, %v575_v59  ;;  %v879_v1 = vpop.f32.mrb[12].mxu0 }
 0x106   : > { %692 = vst [vmem:[%s1188_s14 + $0xc0] sm:$0xff] %v660_v58  ;;  %v630_v0 = vadd.f32 %v1172_v35, %v591_v60  ;;  %v903_v2 = vpop.f32.mrb[12].mxu1  ;;  %v647_v3 = vmax.f32 %v615_v61, 0.0  ;;  %v578_v5 = vmul.f32 %v879_v1, %v1167_v33  ;;  %v459_v7 = vpop.f32.mrb[13].mxu0 }
 0x107   : > { %v663_v4 = vmax.f32 %v631_v62, 0.0  ;;  %v594_v6 = vmul.f32 %v903_v2, %v1167_v33  ;;  %v539_v8 = vpop.f32.mrb[13].mxu1  ;;  %v646_v9 = vmax.f32 %v614_v63, 0.0  ;;  %v577_v11 = vmul.f32 %v1167_v33, %v459_v7 }
 0x108   : > { %v662_v10 = vmax.f32 %v630_v0, 0.0  ;;  %v593_v12 = vmul.f32 %v1167_v33, %v539_v8  ;;  %679 = vst [vmem:[%s1188_s14 + $0x58] sm:$0xff] %v647_v3  ;;  %v617_v13 = vadd.f32 %v1172_v35, %v578_v5 }
 0x109   : > { %695 = vst [vmem:[%s1188_s14 + $0xd8] sm:$0xff] %v663_v4  ;;  %v633_v14 = vadd.f32 %v1172_v35, %v594_v6  ;;  %678 = vst [vmem:[%s1188_s14 + $0x50] sm:$0xff] %v646_v9  ;;  %v616_v15 = vadd.f32 %v1172_v35, %v577_v11  ;;  %v882_v17 = vpop.f32.mrb[14].mxu0 }
 0x10a   : > { %694 = vst [vmem:[%s1188_s14 + $0xd0] sm:$0xff] %v662_v10  ;;  %v632_v16 = vadd.f32 %v1172_v35, %v593_v12  ;;  %v906_v18 = vpop.f32.mrb[14].mxu1  ;;  %v649_v19 = vmax.f32 %v617_v13, 0.0  ;;  %v580_v21 = vmul.f32 %v882_v17, %v1167_v33  ;;  %v469_v23 = vpop.f32.mrb[15].mxu0 }
 0x10b   : > { %v665_v20 = vmax.f32 %v633_v14, 0.0  ;;  %v596_v22 = vmul.f32 %v906_v18, %v1167_v33  ;;  %v549_v24 = vpop.f32.mrb[15].mxu1  ;;  %v648_v25 = vmax.f32 %v616_v15, 0.0  ;;  %v579_v27 = vmul.f32 %v1167_v33, %v469_v23 }
 0x10c   : > { %v664_v26 = vmax.f32 %v632_v16, 0.0  ;;  %v595_v28 = vmul.f32 %v1167_v33, %v549_v24  ;;  %681 = vst [vmem:[%s1188_s14 + $0x68] sm:$0xff] %v649_v19  ;;  %v619_v29 = vadd.f32 %v1172_v35, %v580_v21 }
 0x10d   : > { %697 = vst [vmem:[%s1188_s14 + $0xe8] sm:$0xff] %v665_v20  ;;  %v635_v30 = vadd.f32 %v1172_v35, %v596_v22  ;;  %680 = vst [vmem:[%s1188_s14 + $0x60] sm:$0xff] %v648_v25  ;;  %v618_v31 = vadd.f32 %v1172_v35, %v579_v27 }
 0x10e   : > { %696 = vst [vmem:[%s1188_s14 + $0xe0] sm:$0xff] %v664_v26  ;;  %v634_v33 = vadd.f32 %v1172_v35, %v595_v28  ;;  %v651_v32 = vmax.f32 %v619_v29, 0.0 }
 0x10f   : > { %v667_v34 = vmax.f32 %v635_v30, 0.0  ;;  %v650_v36 = vmax.f32 %v618_v31, 0.0 }
 0x110   : > { %v666_v37 = vmax.f32 %v634_v33, 0.0  ;;  %683 = vst [vmem:[%s1188_s14 + $0x78] sm:$0xff] %v651_v32 }
 0x111   : > { %699 = vst [vmem:[%s1188_s14 + $0xf8] sm:$0xff] %v667_v34  ;;  %682 = vst [vmem:[%s1188_s14 + $0x70] sm:$0xff] %v650_v36 }
 0x112   : > { %698 = vst [vmem:[%s1188_s14 + $0xf0] sm:$0xff] %v666_v37 }
 0x113   : > { %963 = shalt.err (!%p960_p3)
}
 0x114   : > { %s964_s7 = scalar_lea.hbm %s1275_s27, 4096  ;;  %s968_s10 = scalar_lea.hbm %s1330_s4, 8192 }
 0x115   : > { %p965_p4 = scmp.ne.s32.totalorder %s1275_s27, %s964_s7  ;;  %p969_p9 = scmp.lt.u32.totalorder %s1275_s27, %s1330_s4 }
 0x116   : > { %p970_p10 = scmp.lt.u32.totalorder %s968_s10, %s964_s7  ;;  %p972_p12 = scmp.lt.u32.totalorder %s964_s7, %s1275_s27 }
 0x117   : > { %p966_p7 = pnand %p965_p4, %p1080_p5 }
 0x118   : > { %p971_p11 = por %p970_p10, %p969_p9 }
 0x119   : > { %p967_p8 = pneg %p966_p7 }
 0x11a   : > { %p973_p13 = por %p972_p12, %p971_p11 }
 0x11c   : > { %p974_p0 = pnand %p973_p13, %p967_p8 }
 0x11e   : > { %977 = shalt.err (!%p974_p0)
}
 0x11f   : > { %s1015_s13 = smov 128   ;;  %s1016_s14 = smov 8  }
 0x120   : > { %909 = dma.vmem_to_hbm [thread:$0]  (%p1080_p5), %s1277_s22, 4096, %s1275_s27, %s1285_s28, %s1015_s13, %s1015_s13, %s1016_s14  }
 0x121 PF: > { %p915_p1 = scmp.ge.s32.totalorder %s1012_s18, 2  ;;  %s729_s20 = sand.u32 1, %s1000_s15  }
 0x122   : > { %s730_s19 = scalar_lea.sflag [#allocation3], %s729_s20 }
 0x123   : > { %p912_p2 = pnand %p915_p1, %p1084_p6 }
 0x125   : > { %995 = dma.done.wait (!%p912_p2), %s730_s19, 4096  }
 0x126   : > { %997 = vsyncadd (!%p912_p2), %s730_s19, 4294963200  ;;  %p14_p3 = scmp.ge.s32.totalorder %s1067_s21, 4   ;;  %s1333_s15 = smov %s1004_s16 }
 0x127   : > { %s1334_s16 = smov %s1008_s17  ;;  %s1335_s17 = smov %s1078_s24 }
 0x128   : > { %s1336_s18 = smov %s1067_s21  ;;  %16 = sbr.rel (!%p14_p3) target bundleno = 3 (0x3), region = 71 }
 0x12f   :  { %735 = vsyncpa [#allocation3], 1 }
 0x130   :  { %737 = vsyncpa [#allocation3 + $0x1], 1 }

</bundles_post_ra>
